<compile_context>
chip_gen: v6e
topology: v6e:2x2x1
jax: 0.10.0
libtpu: 0.0.40
codegen_flags: <defaults>
</compile_context>

<pallas_src>
import itertools

import jax
import jax.numpy as jnp
from jax.experimental import pallas as pl
from jax.experimental.pallas import tpu as pltpu


PERMUTATIONS = list(itertools.permutations(range(4)))          # 24 jigsaw classes
PERM_TABLE = jnp.asarray(PERMUTATIONS, dtype=jnp.int32)        # (24, 4)

_VMEM_LIMIT = 32 * 1024 * 1024   # safe on v5e/v6e/v7x (<= physical on all gens)


# ----------------------------- Pallas kernel -------------------------------

def _pick_row_tile(hw, max_tile=512):
    """Largest divisor of hw that is a multiple of 8 and <= max_tile, else hw."""
    if hw <= max_tile:
        return hw
    for t in range(max_tile, 7, -8):
        if hw % t == 0:
            return t
    return hw


def conv_relu_gap_heads(x, conv_w, conv_b, head_w, head_b,
                        stride=2, pad=1, compute_dtype=jnp.bfloat16):
    """Fully fused proxy feature-extractor + heads:

        scores = relu(conv3x3(x) + b).mean(H, W) @ head_w + head_b

    Implemented as a single Pallas kernel: im2col matmul (bf16 MXU, f32 acc),
    bias + ReLU + partial global-average-pool per row tile, and a final
    lane-dense head matmul in the finalize phase of the row-tile reduction.

    x: (B, C, H, W) f32, conv_w: (Cout, C, 3, 3), conv_b: (Cout,)
    head_w: (Cout, Npad) f32 (Npad multiple of 128), head_b: (Npad,)
    returns (B, Npad) f32 scores.
    """
    B, C, H, W = x.shape
    Cout, _, kh, kw = conv_w.shape
    Npad = head_w.shape[1]
    assert Npad % 128 == 0, "head output must be lane-padded to a multiple of 128"

    cols, Ho, Wo = im2col_bhwk(x, kh, kw, stride, pad)          # (B, HW, K) f32
    HW = Ho * Wo
    K = C * kh * kw

    cols = cols.astype(compute_dtype)                           # bf16 LHS
    wmat = conv_w.reshape(Cout, K).T.astype(compute_dtype)      # (K, Cout) bf16
    bias = conv_b.reshape(1, Cout).astype(jnp.float32)          # f32 epilogue
    head_b2 = head_b.reshape(1, Npad).astype(jnp.float32)

    tm = _pick_row_tile(HW)
    m_tiles = HW // tm
    inv_hw = 1.0 / float(HW)

    def kernel(cols_ref, w_ref, b_ref, hw_ref, hb_ref, o_ref, acc_ref):
        m = pl.program_id(1)

        @pl.when(m == 0)
        def _init():
            acc_ref[...] = jnp.zeros_like(acc_ref)

        y = jnp.dot(cols_ref[...], w_ref[...],
                    preferred_element_type=jnp.float32)         # (tm, Cout) f32
        y = jnp.maximum(y + b_ref[...], 0.0)                    # bias + ReLU (f32)
        acc_ref[...] += jnp.sum(y, axis=0, keepdims=True)       # partial GAP sum

        @pl.when(m == pl.num_programs(1) - 1)
        def _finalize():
            feat = acc_ref[...] * inv_hw                        # (1, Cout) f32
            scores = jnp.dot(feat, hw_ref[...],
                             preferred_element_type=jnp.float32) + hb_ref[...]
            o_ref[...] = scores.astype(o_ref.dtype)             # lane-dense store

    itemsize = jnp.dtype(compute_dtype).itemsize
    cost = pl.CostEstimate(
        flops=2 * B * HW * K * Cout + 2 * B * Cout * Npad,
        transcendentals=0,
        bytes_accessed=(B * HW * K * itemsize            # im2col LHS
                        + K * Cout * itemsize            # conv weights
                        + Cout * 4                       # conv bias
                        + Cout * Npad * 4 + Npad * 4     # head weights + bias
                        + B * Npad * 4),                 # fused output
    )

    out = pl.pallas_call(
        kernel,
        out_shape=jax.ShapeDtypeStruct((B, 1, Npad), jnp.float32),
        grid=(B, m_tiles),
        in_specs=[
            pl.BlockSpec((None, tm, K), lambda b, m: (b, m, 0)),   # im2col rows
            pl.BlockSpec((K, Cout), lambda b, m: (0, 0)),          # conv weights
            pl.BlockSpec((1, Cout), lambda b, m: (0, 0)),          # conv bias
            pl.BlockSpec((Cout, Npad), lambda b, m: (0, 0)),       # head weights
            pl.BlockSpec((1, Npad), lambda b, m: (0, 0)),          # head bias
        ],
        out_specs=pl.BlockSpec((None, 1, Npad), lambda b, m: (b, 0, 0)),
        scratch_shapes=[pltpu.VMEM((1, Cout), jnp.float32)],       # GAP accumulator
        compiler_params=pltpu.CompilerParams(
            dimension_semantics=("parallel", "arbitrary"),
            vmem_limit_bytes=_VMEM_LIMIT,
        ),
        cost_estimate=cost,
    )(cols, wmat, bias, head_w.astype(jnp.float32), head_b2)
    return out.reshape(B, Npad)


# ------------------------------- JAX glue ----------------------------------

def im2col_bhwk(x, kh, kw, stride, pad):
    """x: (B, C, H, W) -> (B, Ho*Wo, C*kh*kw) patch matrix; cols ordered
    (c, kh, kw) c-major (matches PyTorch conv weight reshape)."""
    B, C, H, W = x.shape
    xp = jnp.pad(x, ((0, 0), (0, 0), (pad, pad), (pad, pad)))
    Ho = (H + 2 * pad - kh) // stride + 1
    Wo = (W + 2 * pad - kw) // stride + 1
    cols = []
    for i in range(kh):
        for j in range(kw):
            cols.append(xp[:, :, i:i + stride * Ho:stride, j:j + stride * Wo:stride])
    cols = jnp.stack(cols, axis=2)                               # (B, C, kh*kw, Ho, Wo)
    cols = cols.transpose(0, 3, 4, 1, 2).reshape(B, Ho * Wo, C * kh * kw)
    return cols, Ho, Wo


def shuffle_patches_batch(x, patch_size, key):
    """ShufflePatches: permute the 2x2 grid of patches per image (fresh random
    permutation per image per call). Returns shuffled batch + labels (0..23)."""
    B, C, H, W = x.shape
    gh, gw = H // patch_size, W // patch_size
    assert gh * gw == 4, "jigsaw setup assumes a 2x2 patch grid (4 patches)"
    labels = jax.random.randint(key, (B,), 0, PERM_TABLE.shape[0], dtype=jnp.int32)
    perms = PERM_TABLE[labels]                                   # (B, 4)
    # unfold: (B, 4, C, ps, ps), patch index row-major over the grid
    patches = x.reshape(B, C, gh, patch_size, gw, patch_size)
    patches = patches.transpose(0, 2, 4, 1, 3, 5).reshape(B, gh * gw, C,
                                                          patch_size, patch_size)
    shuffled = jnp.take_along_axis(patches, perms[:, :, None, None, None], axis=1)
    # fold back
    shuffled = shuffled.reshape(B, gh, gw, C, patch_size, patch_size)
    shuffled = shuffled.transpose(0, 3, 1, 4, 2, 5).reshape(B, C, H, W)
    return shuffled, labels


def init_params(key, in_ch, feat_dim, num_class, num_jigsaw=24):
    k1, k2, k3, k4 = jax.random.split(key, 4)
    return {
        "conv_w": 0.1 * jax.random.normal(k1, (feat_dim, in_ch, 3, 3), jnp.float32),
        "conv_b": jnp.zeros((feat_dim,), jnp.float32),
        "cls_w": 0.1 * jax.random.normal(k2, (num_class, feat_dim), jnp.float32),
        "cls_b": jnp.zeros((num_class,), jnp.float32),    # classifier.bias.fill_(0)
        "jig_w": 0.1 * jax.random.normal(k3, (num_jigsaw, feat_dim), jnp.float32),
        "jig_b": 0.01 * jax.random.normal(k4, (num_jigsaw,), jnp.float32),
    }


def baseline_train_forward(x, params, patch_size, key):
    """Matches BaselineTrain.forward: returns
    (classification_scores, classification_scores_2, jigsaw_scores, permutation_labels)."""
    B = x.shape[0]
    num_class = params["cls_w"].shape[0]
    num_jig = params["jig_w"].shape[0]

    shuffled, perm_labels = shuffle_patches_batch(x, patch_size, key)

    # Batch both feature passes into one kernel sweep: rows [0:B]=shuffled, [B:2B]=x
    stacked = jnp.concatenate([shuffled, x], axis=0)                     # (2B, C, H, W)

    # Fuse classifier + jigsaw heads into one lane-dense matmul (pad N to 128)
    w_comb = jnp.concatenate([params["cls_w"].T, params["jig_w"].T], axis=1)
    b_comb = jnp.concatenate([params["cls_b"], params["jig_b"]], axis=0)
    ncomb = num_class + num_jig
    npad = ((ncomb + 127) // 128) * 128
    w_comb = jnp.pad(w_comb, ((0, 0), (0, npad - ncomb)))
    b_comb = jnp.pad(b_comb, (0, npad - ncomb))

    # Single fused pallas_call: conv + bias + ReLU + GAP + heads
    scores = conv_relu_gap_heads(stacked, params["conv_w"], params["conv_b"],
                                 w_comb, b_comb)                          # (2B, npad)

    cls_scores = scores[:B, :num_class]                  # classifier(feature(shuffled))
    cls_scores_2 = scores[B:, :num_class]                # classifier(feature(x))
    jig_scores = scores[:B, num_class:ncomb]             # jigsaw_classifier(feature(shuffled))
    return cls_scores, cls_scores_2, jig_scores, perm_labels


def _reference_forward(x, params, patch_size, key):
    """Pure-JAX reference (same bf16 conv operands) for a numerical check."""
    shuffled, labels = shuffle_patches_batch(x, patch_size, key)

    def feat(z):
        y = jax.lax.conv_general_dilated(
            z.astype(jnp.bfloat16), params["conv_w"].astype(jnp.bfloat16),
            window_strides=(2, 2), padding=((1, 1), (1, 1)),
            dimension_numbers=("NCHW", "OIHW", "NCHW"),
            preferred_element_type=jnp.float32)
        y = jnp.maximum(y + params["conv_b"][None, :, None, None], 0.0)
        return jnp.mean(y, axis=(2, 3))

    out, out2 = feat(shuffled), feat(x)
    cls = out @ params["cls_w"].T + params["cls_b"]
    cls2 = out2 @ params["cls_w"].T + params["cls_b"]
    jig = out @ params["jig_w"].T + params["jig_b"]
    return cls, cls2, jig, labels


if __name__ == "__main__":
    key = jax.random.PRNGKey(0)
    kx, kp, ks = jax.random.split(key, 3)

    B, C, H, W = 2, 4, 16, 16            # small analogue of (B, 3, 224, 224)
    patch_size = 8                       # analogue of patch_size=112 (2x2 grid)
    num_class = 5
    feat_dim = 128                       # small (lane-dense) analogue of final_feat_dim=512

    x = jax.random.normal(kx, (B, C, H, W), dtype=jnp.float32)
    params = init_params(kp, in_ch=C, feat_dim=feat_dim, num_class=num_class)

    fwd = jax.jit(lambda xx, kk: baseline_train_forward(xx, params, patch_size, kk))
    cls, cls2, jig, labels = fwd(x, ks)
    jax.block_until_ready((cls, cls2, jig, labels))

    assert cls.shape == (B, num_class)
    assert cls2.shape == (B, num_class)
    assert jig.shape == (B, 24)
    assert labels.shape == (B,)

    # numerical check against a pure-JAX reference
    rcls, rcls2, rjig, rlabels = _reference_forward(x, params, patch_size, ks)
    assert jnp.array_equal(labels, rlabels)
    assert jnp.allclose(cls, rcls, atol=2e-2, rtol=2e-2)
    assert jnp.allclose(cls2, rcls2, atol=2e-2, rtol=2e-2)
    assert jnp.allclose(jig, rjig, atol=2e-2, rtol=2e-2)

    print("KERNEL_OK")
</pallas_src>

<mosaic_0001>
module attributes {stable_mosaic.version = 11 : i64} {
  func.func @kernel(%arg0: i32, %arg1: i32, %arg2: memref<1x64x36xbf16, #tpu.memory_space<vmem>>, %arg3: memref<36x128xbf16, #tpu.memory_space<vmem>>, %arg4: memref<1x128xf32, #tpu.memory_space<vmem>>, %arg5: memref<128x128xf32, #tpu.memory_space<vmem>>, %arg6: memref<1x128xf32, #tpu.memory_space<vmem>>, %arg7: memref<1x1x128xf32, #tpu.memory_space<vmem>>, %arg8: memref<1x128xf32, #tpu.memory_space<vmem>>) attributes {dimension_semantics = [#tpu.dimension_semantics<parallel>, #tpu.dimension_semantics<arbitrary>], iteration_bounds = array<i64: 4, 1>, scalar_prefetch = 0 : i64, scratch_operands = 1 : i64, tpu.core_type = #tpu.core_type<tc>, window_params = [{transform_indices = @transform_0, window_bounds = array<i64: 1, 64, 36>}, {pipeline_mode = #tpu.pipeline_mode<synchronous>, transform_indices = @transform_1, window_bounds = array<i64: 36, 128>}, {pipeline_mode = #tpu.pipeline_mode<synchronous>, transform_indices = @transform_2, window_bounds = array<i64: 1, 128>}, {pipeline_mode = #tpu.pipeline_mode<synchronous>, transform_indices = @transform_3, window_bounds = array<i64: 128, 128>}, {pipeline_mode = #tpu.pipeline_mode<synchronous>, transform_indices = @transform_4, window_bounds = array<i64: 1, 128>}, {transform_indices = @transform_5, window_bounds = array<i64: 1, 1, 128>}]} {
    %c0_i32 = arith.constant 0 : i32
    %0 = arith.cmpi eq, %arg1, %c0_i32 : i32
    %1 = arith.extui %0 : i1 to i32
    %c0_i32_0 = arith.constant 0 : i32
    %2 = arith.cmpi ne, %1, %c0_i32_0 : i32
    scf.if %2 {
      %cst_15 = arith.constant 0.000000e+00 : f32
      %20 = vector.broadcast %cst_15 : f32 to vector<1x128xf32>
      %c0_16 = arith.constant 0 : index
      %c0_17 = arith.constant 0 : index
      %21 = vector.load %arg8[%c0_16, %c0_17] : memref<1x128xf32, #tpu.memory_space<vmem>>, vector<1x128xf32>
      tpu.vector_store %arg8[%c0_16, %c0_17], %20 {strides = array<i32>} : memref<1x128xf32, #tpu.memory_space<vmem>>, vector<1x128xf32>,
    } else {
    }
    %c0 = arith.constant 0 : index
    %c0_1 = arith.constant 0 : index
    %c0_2 = arith.constant 0 : index
    %3 = vector.load %arg2[%c0, %c0_1, %c0_2] : memref<1x64x36xbf16, #tpu.memory_space<vmem>>, vector<1x64x36xbf16>
    %4 = vector.shape_cast %3 : vector<1x64x36xbf16> to vector<64x36xbf16>
    %c0_3 = arith.constant 0 : index
    %c0_4 = arith.constant 0 : index
    %5 = vector.load %arg3[%c0_3, %c0_4] : memref<36x128xbf16, #tpu.memory_space<vmem>>, vector<36x128xbf16>
    %cst = arith.constant dense<0.000000e+00> : vector<64x128xf32>
    %6 = tpu.matmul %4, %5, %cst {dimension_numbers = #tpu.dot_dimension_numbers<[1], [0], [0], [1], [0, 0, 1, 1], [], []>} : vector<64x36xbf16>, vector<36x128xbf16>, vector<64x128xf32> -> vector<64x128xf32>
    %c0_5 = arith.constant 0 : index
    %c0_6 = arith.constant 0 : index
    %7 = vector.load %arg4[%c0_5, %c0_6] : memref<1x128xf32, #tpu.memory_space<vmem>>, vector<1x128xf32>
    %8 = vector.broadcast %7 : vector<1x128xf32> to vector<64x128xf32>
    %9 = arith.addf %6, %8 : vector<64x128xf32>
    %cst_7 = arith.constant 0.000000e+00 : f32
    %10 = vector.broadcast %cst_7 : f32 to vector<64x128xf32>
    %11 = arith.maximumf %9, %10 : vector<64x128xf32>
    %c0_8 = arith.constant 0 : index
    %c0_9 = arith.constant 0 : index
    %12 = vector.load %arg8[%c0_8, %c0_9] : memref<1x128xf32, #tpu.memory_space<vmem>>, vector<1x128xf32>
    %cst_10 = arith.constant dense<0.000000e+00> : vector<128xf32>
    %13 = vector.multi_reduction <add>, %11, %cst_10 [0] : vector<64x128xf32> to vector<128xf32>
    %14 = vector.shape_cast %13 : vector<128xf32> to vector<1x128xf32>
    %15 = arith.addf %12, %14 : vector<1x128xf32>
    %c0_11 = arith.constant 0 : index
    %c0_12 = arith.constant 0 : index
    %16 = vector.load %arg8[%c0_11, %c0_12] : memref<1x128xf32, #tpu.memory_space<vmem>>, vector<1x128xf32>
    tpu.vector_store %arg8[%c0_11, %c0_12], %15 {strides = array<i32>} : memref<1x128xf32, #tpu.memory_space<vmem>>, vector<1x128xf32>,
    %c0_i32_13 = arith.constant 0 : i32
    %17 = arith.cmpi eq, %arg1, %c0_i32_13 : i32
    %18 = arith.extui %17 : i1 to i32
    %c0_i32_14 = arith.constant 0 : i32
    %19 = arith.cmpi ne, %18, %c0_i32_14 : i32
    scf.if %19 {
      %c0_15 = arith.constant 0 : index
      %c0_16 = arith.constant 0 : index
      %20 = vector.load %arg8[%c0_15, %c0_16] : memref<1x128xf32, #tpu.memory_space<vmem>>, vector<1x128xf32>
      %cst_17 = arith.constant 1.562500e-02 : f32
      %21 = vector.broadcast %cst_17 : f32 to vector<1x128xf32>
      %22 = arith.mulf %20, %21 : vector<1x128xf32>
      %c0_18 = arith.constant 0 : index
      %c0_19 = arith.constant 0 : index
      %23 = vector.load %arg5[%c0_18, %c0_19] : memref<128x128xf32, #tpu.memory_space<vmem>>, vector<128x128xf32>
      %cst_20 = arith.constant dense<0.000000e+00> : vector<1x128xf32>
      %24 = tpu.matmul %22, %23, %cst_20 {dimension_numbers = #tpu.dot_dimension_numbers<[1], [0], [0], [1], [0, 0, 1, 1], [], []>} : vector<1x128xf32>, vector<128x128xf32>, vector<1x128xf32> -> vector<1x128xf32>
      %c0_21 = arith.constant 0 : index
      %c0_22 = arith.constant 0 : index
      %25 = vector.load %arg6[%c0_21, %c0_22] : memref<1x128xf32, #tpu.memory_space<vmem>>, vector<1x128xf32>
      %26 = arith.addf %24, %25 : vector<1x128xf32>
      %c0_23 = arith.constant 0 : index
      %c0_24 = arith.constant 0 : index
      %c0_25 = arith.constant 0 : index
      %27 = vector.load %arg7[%c0_23, %c0_24, %c0_25] : memref<1x1x128xf32, #tpu.memory_space<vmem>>, vector<1x1x128xf32>
      %28 = vector.shape_cast %27 : vector<1x1x128xf32> to vector<1x128xf32>
      %29 = vector.shape_cast %26 : vector<1x128xf32> to vector<1x1x128xf32>
      tpu.vector_store %arg7[%c0_23, %c0_24, %c0_25], %29 {strides = array<i32>} : memref<1x1x128xf32, #tpu.memory_space<vmem>>, vector<1x1x128xf32>,
    } else {
    }
    return
  }
  func.func @transform_0(%arg0: i32, %arg1: i32) -> (i32, i32, i32) {
    %c0_i32 = arith.constant 0 : i32
    %c0_i32_0 = arith.constant 0 : i32
    return %arg0, %arg1, %c0_i32 : i32, i32, i32
  }
  func.func @transform_1(%arg0: i32, %arg1: i32) -> (i32, i32) {
    %c0_i32 = arith.constant 0 : i32
    %c0_i32_0 = arith.constant 0 : i32
    %c0_i32_1 = arith.constant 0 : i32
    return %c0_i32, %c0_i32_0 : i32, i32
  }
  func.func @transform_2(%arg0: i32, %arg1: i32) -> (i32, i32) {
    %c0_i32 = arith.constant 0 : i32
    %c0_i32_0 = arith.constant 0 : i32
    %c0_i32_1 = arith.constant 0 : i32
    return %c0_i32, %c0_i32_0 : i32, i32
  }
  func.func @transform_3(%arg0: i32, %arg1: i32) -> (i32, i32) {
    %c0_i32 = arith.constant 0 : i32
    %c0_i32_0 = arith.constant 0 : i32
    %c0_i32_1 = arith.constant 0 : i32
    return %c0_i32, %c0_i32_0 : i32, i32
  }
  func.func @transform_4(%arg0: i32, %arg1: i32) -> (i32, i32) {
    %c0_i32 = arith.constant 0 : i32
    %c0_i32_0 = arith.constant 0 : i32
    %c0_i32_1 = arith.constant 0 : i32
    return %c0_i32, %c0_i32_0 : i32, i32
  }
  func.func @transform_5(%arg0: i32, %arg1: i32) -> (i32, i32, i32) {
    %c0_i32 = arith.constant 0 : i32
    %c0_i32_0 = arith.constant 0 : i32
    %c0_i32_1 = arith.constant 0 : i32
    return %arg0, %c0_i32, %c0_i32_0 : i32, i32, i32
  }
}

</mosaic_0001>

<bundles_post_ra>
// kernel: _lambda_.1
= control target key start
LH: loop header
LB: loop body
LE: loop exit
PB: predicated region body
PF: predicated region fallthrough
CT: control target
= control target key end

     0   :  { %s755_s18 = smov 0   ;;  %s757_s19 = smov 0   ;;  %s855_s0 = inlined_call_operand.vmem [shape: bf16[4,64,36], index: 0, kind: input, shape index: {}]   ;;  %s856_s1 = inlined_call_operand.vmem [shape: bf16[36,128], index: 1, kind: input, shape index: {}]   ;;  %s857_s2 = inlined_call_operand.vmem [shape: f32[1,128], index: 2, kind: input, shape index: {}]   ;;  %s858_s3 = inlined_call_operand.vmem [shape: f32[128,128], index: 3, kind: input, shape index: {}]   ;;  %s859_s4 = inlined_call_operand.vmem [shape: f32[1,128], index: 4, kind: input, shape index: {}]   ;;  %s860_s5 = inlined_call_operand.vmem [shape: f32[4,1,128], index: 5, kind: output, shape index: {}]  }
   0x1   :  { %s759_s20 = smov 0  }
   0x2 LB: > { %s27_s21 = sadd.s32 1, %s717_s19  ;;  %p574_p0 = scmp.ge.s32.totalorder %s721_s20, 1  ;;  %s721_s20 = sphi %s759_s20, %s15_s20   ;;  %s717_s19 = sphi %s757_s19, %s862_s19   ;;  %s713_s18 = sphi %s755_s18, %s861_s18  }
   0x3   : > { %p29_p1 = scmp.ge.s32.totalorder %s27_s21, 4  ;;  %p206_p2 = scmp.lt.s32.totalorder %s721_s20, 5 }
   0x5   : > { %s864_s21 = smov (%p29_p1, %s27_s21), 0  ;;  %p207_p3 = pnand %p574_p0, %p206_p2 }
   0x6   : > { %p237_p4 = scmp.lt.s32.totalorder (!%p207_p3), %s713_s18, 3 }
   0x7   : > { %210 = sbr.rel (%p207_p3) target bundleno = 462 (0x1ce), region = 40 }
   0xc   : > { %v692_v0 = vld [vmem:[%s856_s1 + $0x10] ss:$0 sps:$4 sm:$0x33]   ;;  %vm323_vm0 = vcmask 1041408   ;;  %v693_v1 = vld [vmem:[%s856_s1 + $0x8] sm:$0xff]   ;;  %s866_s18 = smov (!%p237_p4, %s713_s18), 3 }
   0xd   : > { %665 = vmatprep.subr.msk.bf16.mxu0 %vm323_vm0, %v692_v0  ;;  %v325_v2 = vsel %vm323_vm0, %v692_v0, 0  ;;  %v694_v3 = vld [vmem:[%s856_s1] sm:$0xff]   ;;  %s591_s28 = sshll.u32 %s866_s18, 5  ;;  %vm310_vm1 = vcmask 293888   ;;  %v723_v8 = vmov 0.0   ;;  %v436_v9 = vld [vmem:[%s858_s3 + $0x78] sm:$0xff] }
   0xe   : > { %617 = vmatpush3.bf16.msra.mxu0 %v325_v2  ;;  %s244_s6 = scalar_lea.vmem %s855_s0, %s591_s28  ;;  %254 = vst [vmem:[#allocation2] sm:$0x1] %v723_v8  ;;  %630 = vmatprep.subr.mxu1 %v723_v8  ;;  %v435_v10 = vld [vmem:[%s858_s3 + $0x70] sm:$0xff]  ;;  %v434_v11 = vld [vmem:[%s858_s3 + $0x68] sm:$0xff]  ;;  %v433_v12 = vld [vmem:[%s858_s3 + $0x60] sm:$0xff]  ;;  %vm724_vm2 = vmmov 0   ;;  %s248_s28 = scalar_lea.vmem %s860_s5, %s866_s18 }
   0xf   : > { %618 = vmatprep.subr.bf16.mxu0 %v693_v1  ;;  %v695_v4 = vld [vmem:[%s244_s6] sm:$0xff]   ;;  %v696_v5 = vld [vmem:[%s244_s6 + $0x8] sm:$0xff]   ;;  %v697_v6 = vld [vmem:[%s244_s6 + $0x10] sm:$0xff]   ;;  %631 = vmatpush3.msra.mxu1 %v436_v9 }
  0x10   : > { %622 = vmatprep.mubr.msk.bf16.mxu0 %vm310_vm1, %v695_v4  ;;  %v698_v7 = vld [vmem:[%s244_s6 + $0x18] sm:$0xff]   ;;  %632 = vmatprep.subr.mxu1 %v723_v8  ;;  %v431_v14 = vld [vmem:[%s858_s3 + $0x50] sm:$0xff]  ;;  %v430_v15 = vld [vmem:[%s858_s3 + $0x48] sm:$0xff] }
  0x11   : > { %633 = vmatpush3.msra.mxu1 %v435_v10  ;;  %v432_v13 = vld [vmem:[%s858_s3 + $0x58] sm:$0xff]  ;;  %v429_v16 = vld [vmem:[%s858_s3 + $0x40] sm:$0xff]  ;;  %v427_v18 = vld [vmem:[%s858_s3 + $0x30] sm:$0xff]  ;;  %662 = vmatprep.mubr.msk.f32.mxu1 %vm724_vm2, %v723_v8 }
  0x12   : > { %619 = vmatpush3.bf16.msra.mxu0 %v693_v1  ;;  %634 = vmatprep.subr.mxu1 %v723_v8  ;;  %v428_v17 = vld [vmem:[%s858_s3 + $0x38] sm:$0xff]  ;;  %v426_v19 = vld [vmem:[%s858_s3 + $0x28] sm:$0xff]  ;;  %v425_v20 = vld [vmem:[%s858_s3 + $0x20] sm:$0xff] }
  0x13   : > { %620 = vmatprep.subr.bf16.mxu0 %v694_v3  ;;  %635 = vmatpush3.msra.mxu1 %v434_v11  ;;  %v424_v21 = vld [vmem:[%s858_s3 + $0x18] sm:$0xff]  ;;  %v423_v22 = vld [vmem:[%s858_s3 + $0x10] sm:$0xff]  ;;  %v422_v23 = vld [vmem:[%s858_s3 + $0x8] sm:$0xff] }
  0x14   : > { %636 = vmatprep.subr.mxu1 %v723_v8  ;;  %v421_v24 = vld [vmem:[%s858_s3] sm:$0xff] }
  0x15   : > { %637 = vmatpush3.msra.mxu1 %v433_v12  ;;  %v577_v27 = vld [vmem:[%s857_s2] ss:$0 sm:$0xff] }
  0x16   : > { %621 = vmatpush3.bf16.msra.mxu0 %v694_v3  ;;  %638 = vmatprep.subr.mxu1 %v723_v8  ;;  %v400_v62 = vld [vmem:[#allocation2] sm:$0x1] }
  0x17   : > { %639 = vmatpush3.msra.mxu1 %v432_v13  ;;  %v437_v3 = vld [vmem:[%s859_s4] sm:$0x1] }
  0x18   : > { %640 = vmatprep.subr.mxu1 %v723_v8 }
  0x19   : > { %623 = vmatmul.mubr.msk.bf16.vlgmr.msra.gmra.mxu0 %vm310_vm1, %v696_v5  ;;  %641 = vmatpush3.msra.mxu1 %v431_v14 }
  0x1a   : > { %626 = vmatprep.mubr.msk.bf16.mxu0 %vm310_vm1, %v697_v6  ;;  %642 = vmatprep.subr.mxu1 %v723_v8 }
  0x1b   : > { %643 = vmatpush3.msra.mxu1 %v430_v15 }
  0x1c   : > { %644 = vmatprep.subr.mxu1 %v723_v8 }
  0x1d   : > { %645 = vmatpush3.msra.mxu1 %v429_v16 }
  0x1e   : > { %646 = vmatprep.subr.mxu1 %v723_v8 }
  0x1f   : > { %647 = vmatpush3.msra.mxu1 %v428_v17 }
  0x20   : > { %648 = vmatprep.subr.mxu1 %v723_v8 }
  0x21   : > { %627 = vmatmul.mubr.msk.bf16.gmra.mxu0 %vm310_vm1, %v698_v7  ;;  %649 = vmatpush3.msra.mxu1 %v427_v18 }
  0x22   : > { %650 = vmatprep.subr.mxu1 %v723_v8 }
  0x23   : > { %651 = vmatpush3.msra.mxu1 %v426_v19 }
  0x24   : > { %652 = vmatprep.subr.mxu1 %v723_v8 }
  0x25   : > { %653 = vmatpush3.msra.mxu1 %v425_v20 }
  0x26   : > { %654 = vmatprep.subr.mxu1 %v723_v8 }
  0x27   : > { %655 = vmatpush3.msra.mxu1 %v424_v21 }
  0x28   : > { %656 = vmatprep.subr.mxu1 %v723_v8 }
  0x29   : > { %657 = vmatpush3.msra.mxu1 %v423_v22 }
  0x2a   : > { %658 = vmatprep.subr.mxu1 %v723_v8 }
  0x2b   : > { %659 = vmatpush3.msra.mxu1 %v422_v23 }
  0x2c   : > { %660 = vmatprep.subr.mxu1 %v723_v8 }
  0x2d   : > { %661 = vmatpush3.msra.mxu1 %v421_v24 }
  0xd9   : > { %v624_v25 = vpop.f32.mrf.mxu0 }
  0xda   : > { %v370_v31 = vadd.f32 %v624_v25, %v577_v27 }
  0xdb   : > { %v361_v26 = vpop.f32.mrf.mxu0 }
  0xdc   : > { %v362_v29 = vadd.f32 %v577_v27, %v361_v26  ;;  %v394_v38 = vmax.f32 %v370_v31, 0.0 }
  0xdd   : > { %v625_v28 = vpop.f32.mrf.mxu0 }
  0xde   : > { %v392_v34 = vmax.f32 %v362_v29, 0.0  ;;  %v373_v35 = vadd.f32 %v625_v28, %v577_v27 }
  0xdf   : > { %v364_v30 = vpop.f32.mrf.mxu0 }
  0xe0   : > { %v365_v32 = vadd.f32 %v577_v27, %v364_v30  ;;  %v395_v42 = vmax.f32 %v373_v35, 0.0 }
  0xe1   : > { %v628_v33 = vpop.f32.mrf.mxu0 }
  0xe2   : > { %v393_v36 = vmax.f32 %v365_v32, 0.0  ;;  %v386_v45 = vadd.f32 %v628_v33, %v577_v27 }
  0xe3   : > { %v377_v37 = vpop.f32.mrf.mxu0 }
  0xe4   : > { %v401_v39 = vadd.f32 %v393_v36, %v392_v34  ;;  %v378_v40 = vadd.f32 %v577_v27, %v377_v37  ;;  %v398_v52 = vmax.f32 %v386_v45, 0.0 }
  0xe5   : > { %v629_v41 = vpop.f32.mrf.mxu0 }
  0xe6   : > { %v402_v43 = vadd.f32 %v401_v39, %v394_v38  ;;  %v396_v46 = vmax.f32 %v378_v40, 0.0  ;;  %v389_v50 = vadd.f32 %v629_v41, %v577_v27 }
  0xe7   : > { %v380_v44 = vpop.f32.mrf.mxu0 }
  0xe8   : > { %v403_v47 = vadd.f32 %v402_v43, %v395_v42  ;;  %v381_v48 = vadd.f32 %v577_v27, %v380_v44  ;;  %v399_v54 = vmax.f32 %v389_v50, 0.0 }
  0xea   : > { %v404_v49 = vadd.f32 %v403_v47, %v396_v46  ;;  %v397_v51 = vmax.f32 %v381_v48, 0.0 }
  0xec   : > { %v405_v53 = vadd.f32 %v404_v49, %v397_v51 }
  0xee   : > { %v406_v55 = vadd.f32 %v405_v53, %v398_v52 }
  0xf0   : > { %v407_v56 = vadd.f32 %v406_v55, %v399_v54 }
  0xf2   : > { %v408_v57 = vrot.slane %v407_v56, 4 }
  0xf4   : > { %v409_v58 = vadd.f32 %v408_v57, %v407_v56 }
  0xf6   : > { %v410_v59 = vrot.slane %v409_v58, 2 }
  0xf8   : > { %v411_v60 = vadd.f32 %v410_v59, %v409_v58 }
  0xfa   : > { %v412_v61 = vrot.slane %v411_v60, 1 }
  0xfc   : > { %v413_v63 = vadd.f32 %v412_v61, %v411_v60 }
  0xfe   : > { %v414_v0 = vadd.f32 %v413_v63, %v400_v62 }
 0x100   : > { %415 = vst [vmem:[#allocation2] sm:$0x1] %v414_v0 }
 0x107   : > { %v419_v1 = vld [vmem:[#allocation2] sm:$0x1] }
 0x108   : > { %v420_v2 = vmul.f32 0.015625, %v419_v1 }
 0x10a   : > { %663 = vmatmul.mubr.f32.vlgmr.msra.gmra.mxu1 %v420_v2 }
 0x1ca   : > { %v504_v4 = vpop.f32.mrf.mxu1 }
 0x1cb   : > { %v505_v5 = vadd.f32 %v504_v4, %v437_v3 }
 0x1cc   : > { %v664_v6 = vpop.f32.mrf.mxu1 }
 0x1cd   : > { %508 = vst [vmem:[%s248_s28] sm:$0x1] %v505_v5 }
 0x1ce PF: > { %s15_s20 = sadd.s32 1, %s721_s20   ;;  %s861_s18 = smov %s717_s19 }
 0x1cf   : > { %p12_p5 = scmp.ge.s32.totalorder %s15_s20, 6   ;;  %s862_s19 = smov %s864_s21 }
 0x1d1   :  { %14 = sbr.rel (!%p12_p5) target bundleno = 2 (0x2), region = 78 }

</bundles_post_ra>
